<compile_context>
chip_gen: v7x
topology: tpu7x:2x2x1
jax: 0.10.0
libtpu: 0.0.40
codegen_flags: <defaults>
</compile_context>

<pallas_src>
import functools

import numpy as np
import jax
import jax.numpy as jnp
from jax.experimental import pallas as pl
from jax.experimental.pallas import tpu as pltpu

# Exponent N of the Bernoulli ODE (static compile-time integer, matches self.N).
N_EXP = 3


def _ipow(x, p):
    """x**p for small positive integer p using multiplies only (no EUP, exact for x<0)."""
    assert p >= 1
    out = x
    for _ in range(p - 1):
        out = out * x
    return out


def bernoulli_full_kernel(y_ref, p_ref, q_ref, qnm_ref, pm_ref, yd_ref, jd_ref):
    # y_ref: (tb, n); p_ref/q_ref: (1, n); qnm_ref/pm_ref: (1, n*n) pre-masked;
    # yd_ref: (tb, n); jd_ref: (tb, n*n) (flattened diag_embed, lane-dense).
    y = y_ref[...]
    n = y.shape[-1]

    y_nm1 = _ipow(y, N_EXP - 1)                       # y^(N-1), VALU only
    # yd = Q * y**N - P * y
    yd_ref[...] = q_ref[...] * (y_nm1 * y) - p_ref[...] * y

    # Flattened diag_embed: jd[b, i*(n+1)] = N*Q[i]*y[b,i]^(N-1) - P[i], else 0.
    # qnm/pm are zero on all off-diagonal lanes, so one multiply-subtract fills the slab.
    y_tiled = jnp.tile(y_nm1, (1, n))                 # lane k holds y[b, k % n]^(N-1)
    jd_ref[...] = qnm_ref[...] * y_tiled - pm_ref[...]


def bernoulli_diag_kernel(y_ref, p_ref, q_ref, yd_ref, diag_ref):
    # Minimal-writeback path: emit only the Jacobian diagonal (B, n).
    y = y_ref[...]
    y_nm1 = _ipow(y, N_EXP - 1)
    yd_ref[...] = q_ref[...] * (y_nm1 * y) - p_ref[...] * y
    diag_ref[...] = q_ref[...] * float(N_EXP) * y_nm1 - p_ref[...]


@functools.lru_cache(maxsize=None)
def _diag_mask_np(n):
    # Row-major (n, n) flattening: entry (i, i) sits at k = i*(n+1).
    k = np.arange(n * n)
    return (k % (n + 1) == 0).astype(np.float32)


def precompute_bernoulli_params(P, Q, dtype=jnp.float32):
    """Build the resident parameter rows once per (P, Q); cache/reuse across calls."""
    n = P.shape[0]
    p_row = P.reshape(1, n).astype(dtype)
    q_row = Q.reshape(1, n).astype(dtype)
    mask = jnp.asarray(_diag_mask_np(n), dtype=dtype)
    qn_m = (jnp.tile(Q.astype(dtype) * float(N_EXP), n) * mask).reshape(1, n * n)
    p_m = (jnp.tile(P.astype(dtype), n) * mask).reshape(1, n * n)
    return p_row, q_row, qn_m, p_m


def _round_up(x, m):
    return ((x + m - 1) // m) * m


def _pick_batch_tile(B, target_tb=2048):
    """Batch tile: multiple of 8, <= target_tb, and >= 2 grid steps whenever B >= 16
    so both v7x TensorCores get work.  Padding (not a divisor search) handles ragged B."""
    b8 = _round_up(max(B, 1), 8)
    if b8 <= 8:
        return 8
    if b8 >= 2 * target_tb:
        return target_tb
    return _round_up(pl.cdiv(b8, 2), 8)


def bernoulli_ode_forward(t, y, P, Q, params=None, expand_in_kernel=True):
    """Pallas equivalent of BernoulliODE.forward(t, y) -> (yd, Jd).

    t is unused (API parity). y: (B, n); P, Q: (n,).  Always returns Jd of shape
    (B, n, n).  With expand_in_kernel=False only the Jacobian diagonal is written by
    the kernel and the diag_embed expansion is done downstream (use this when the
    consumer can fuse it / accept the diagonal).
    """
    del t  # unused, as in the PyTorch module
    B, n = y.shape
    dtype = y.dtype

    if params is None:
        params = precompute_bernoulli_params(P, Q, dtype)
    p_row, q_row, qn_m, p_m = params

    tb = _pick_batch_tile(B)
    B_pad = _round_up(B, tb)
    y_in = y if B_pad == B else jnp.pad(y, ((0, B_pad - B), (0, 0)))
    grid = (B_pad // tb,)
    cparams = pltpu.CompilerParams(dimension_semantics=("parallel",))

    if expand_in_kernel:
        yd, jd_flat = pl.pallas_call(
            bernoulli_full_kernel,
            out_shape=(
                jax.ShapeDtypeStruct((B_pad, n), dtype),
                jax.ShapeDtypeStruct((B_pad, n * n), dtype),  # lane-dense Jd
            ),
            grid=grid,
            in_specs=[
                pl.BlockSpec((tb, n), lambda g: (g, 0)),
                pl.BlockSpec((1, n), lambda g: (0, 0)),        # P (resident)
                pl.BlockSpec((1, n), lambda g: (0, 0)),        # Q (resident)
                pl.BlockSpec((1, n * n), lambda g: (0, 0)),    # N*Q on diag lanes
                pl.BlockSpec((1, n * n), lambda g: (0, 0)),    # P on diag lanes
            ],
            out_specs=(
                pl.BlockSpec((tb, n), lambda g: (g, 0)),
                pl.BlockSpec((tb, n * n), lambda g: (g, 0)),
            ),
            compiler_params=cparams,
        )(y_in, p_row, q_row, qn_m, p_m)
        return yd[:B], jd_flat[:B].reshape(B, n, n)

    # Diag-only kernel path: 16x less kernel HBM writeback; expansion done by XLA.
    yd, diag = pl.pallas_call(
        bernoulli_diag_kernel,
        out_shape=(
            jax.ShapeDtypeStruct((B_pad, n), dtype),
            jax.ShapeDtypeStruct((B_pad, n), dtype),
        ),
        grid=grid,
        in_specs=[
            pl.BlockSpec((tb, n), lambda g: (g, 0)),
            pl.BlockSpec((1, n), lambda g: (0, 0)),
            pl.BlockSpec((1, n), lambda g: (0, 0)),
        ],
        out_specs=(
            pl.BlockSpec((tb, n), lambda g: (g, 0)),
            pl.BlockSpec((tb, n), lambda g: (g, 0)),
        ),
        compiler_params=cparams,
    )(y_in, p_row, q_row)
    Jd = diag[:B, :, None] * jnp.eye(n, dtype=dtype)   # diag_embed downstream
    return yd[:B], Jd


def _reference_forward(y, P, Q):
    # Integer exponents -> exact for negative y, matching torch's y ** 3.
    yd = Q * (y ** N_EXP) - P * y
    diag = Q * float(N_EXP) * (y ** (N_EXP - 1)) - P
    Jd = jax.vmap(jnp.diag)(diag)
    return yd, Jd


if __name__ == "__main__":
    key = jax.random.PRNGKey(0)
    k_p, k_q = jax.random.split(key, 2)

    n = 16      # state dimension
    B = 8       # batch size (nbatch)

    # Parameters: torch.rand(n) / 100.0 equivalent, deterministic via PRNGKey(0).
    P = jax.random.uniform(k_p, (n,), dtype=jnp.float32) / 100.0
    Q = jax.random.uniform(k_q, (n,), dtype=jnp.float32) / 100.0

    # y0(nbatch) from the module: outer(linspace(-1,1,B), linspace(1,2,n)) — spans y<0.
    y = jnp.outer(jnp.linspace(-1.0, 1.0, B), jnp.linspace(1.0, 2.0, n)).astype(jnp.float32)
    t = jnp.float32(0.0)

    params = precompute_bernoulli_params(P, Q)

    # 1) Full in-kernel Jd path (default semantics).
    yd, Jd = bernoulli_ode_forward(t, y, P, Q, params=params)
    yd = jax.block_until_ready(yd)
    Jd = jax.block_until_ready(Jd)
    yd_ref, Jd_ref = _reference_forward(y, P, Q)
    assert yd.shape == (B, n) and Jd.shape == (B, n, n)
    assert jnp.allclose(yd, yd_ref, atol=1e-6, rtol=1e-6), float(jnp.max(jnp.abs(yd - yd_ref)))
    assert jnp.allclose(Jd, Jd_ref, atol=1e-6, rtol=1e-6), float(jnp.max(jnp.abs(Jd - Jd_ref)))

    # 2) Ragged batch (exercises padding + a >=2-step grid) on the diag-only fast path.
    B2 = 20
    y2 = jnp.outer(jnp.linspace(-1.0, 1.0, B2), jnp.linspace(1.0, 2.0, n)).astype(jnp.float32)
    yd2, Jd2 = bernoulli_ode_forward(t, y2, P, Q, params=params, expand_in_kernel=False)
    yd2 = jax.block_until_ready(yd2)
    Jd2 = jax.block_until_ready(Jd2)
    yd2_ref, Jd2_ref = _reference_forward(y2, P, Q)
    assert yd2.shape == (B2, n) and Jd2.shape == (B2, n, n)
    assert jnp.allclose(yd2, yd2_ref, atol=1e-6, rtol=1e-6), float(jnp.max(jnp.abs(yd2 - yd2_ref)))
    assert jnp.allclose(Jd2, Jd2_ref, atol=1e-6, rtol=1e-6), float(jnp.max(jnp.abs(Jd2 - Jd2_ref)))

    print("KERNEL_OK")
</pallas_src>

<mosaic_0001>
module attributes {stable_mosaic.version = 11 : i64} {
  func.func @bernoulli_full_kernel(%arg0: i32, %arg1: memref<8x16xf32, #tpu.memory_space<vmem>>, %arg2: memref<1x16xf32, #tpu.memory_space<vmem>>, %arg3: memref<1x16xf32, #tpu.memory_space<vmem>>, %arg4: memref<1x256xf32, #tpu.memory_space<vmem>>, %arg5: memref<1x256xf32, #tpu.memory_space<vmem>>, %arg6: memref<8x16xf32, #tpu.memory_space<vmem>>, %arg7: memref<8x256xf32, #tpu.memory_space<vmem>>) attributes {dimension_semantics = [#tpu.dimension_semantics<parallel>], iteration_bounds = array<i64: 1>, scalar_prefetch = 0 : i64, scratch_operands = 0 : i64, tpu.core_type = #tpu.core_type<tc>, window_params = [{transform_indices = @transform_0, window_bounds = array<i64: 8, 16>}, {pipeline_mode = #tpu.pipeline_mode<synchronous>, transform_indices = @transform_1, window_bounds = array<i64: 1, 16>}, {pipeline_mode = #tpu.pipeline_mode<synchronous>, transform_indices = @transform_2, window_bounds = array<i64: 1, 16>}, {pipeline_mode = #tpu.pipeline_mode<synchronous>, transform_indices = @transform_3, window_bounds = array<i64: 1, 256>}, {pipeline_mode = #tpu.pipeline_mode<synchronous>, transform_indices = @transform_4, window_bounds = array<i64: 1, 256>}, {transform_indices = @transform_5, window_bounds = array<i64: 8, 16>}, {transform_indices = @transform_6, window_bounds = array<i64: 8, 256>}]} {
    %c0 = arith.constant 0 : index
    %c0_0 = arith.constant 0 : index
    %0 = vector.load %arg1[%c0, %c0_0] : memref<8x16xf32, #tpu.memory_space<vmem>>, vector<8x16xf32>
    %1 = arith.mulf %0, %0 : vector<8x16xf32>
    %c0_1 = arith.constant 0 : index
    %c0_2 = arith.constant 0 : index
    %2 = vector.load %arg3[%c0_1, %c0_2] : memref<1x16xf32, #tpu.memory_space<vmem>>, vector<1x16xf32>
    %3 = arith.mulf %1, %0 : vector<8x16xf32>
    %4 = vector.broadcast %2 : vector<1x16xf32> to vector<8x16xf32>
    %5 = arith.mulf %4, %3 : vector<8x16xf32>
    %c0_3 = arith.constant 0 : index
    %c0_4 = arith.constant 0 : index
    %6 = vector.load %arg2[%c0_3, %c0_4] : memref<1x16xf32, #tpu.memory_space<vmem>>, vector<1x16xf32>
    %7 = vector.broadcast %6 : vector<1x16xf32> to vector<8x16xf32>
    %8 = arith.mulf %7, %0 : vector<8x16xf32>
    %9 = arith.subf %5, %8 : vector<8x16xf32>
    %c0_5 = arith.constant 0 : index
    %c0_6 = arith.constant 0 : index
    %10 = vector.load %arg6[%c0_5, %c0_6] : memref<8x16xf32, #tpu.memory_space<vmem>>, vector<8x16xf32>
    tpu.vector_store %arg6[%c0_5, %c0_6], %9 {strides = array<i32>} : memref<8x16xf32, #tpu.memory_space<vmem>>, vector<8x16xf32>,
    %11 = tpu.concatenate %1, %1, %1, %1, %1, %1, %1, %1, %1, %1, %1, %1, %1, %1, %1, %1 in 1 : vector<8x16xf32>, vector<8x16xf32>, vector<8x16xf32>, vector<8x16xf32>, vector<8x16xf32>, vector<8x16xf32>, vector<8x16xf32>, vector<8x16xf32>, vector<8x16xf32>, vector<8x16xf32>, vector<8x16xf32>, vector<8x16xf32>, vector<8x16xf32>, vector<8x16xf32>, vector<8x16xf32>, vector<8x16xf32> -> vector<8x256xf32>
    %c0_7 = arith.constant 0 : index
    %c0_8 = arith.constant 0 : index
    %12 = vector.load %arg4[%c0_7, %c0_8] : memref<1x256xf32, #tpu.memory_space<vmem>>, vector<1x256xf32>
    %13 = vector.broadcast %12 : vector<1x256xf32> to vector<8x256xf32>
    %14 = arith.mulf %13, %11 : vector<8x256xf32>
    %c0_9 = arith.constant 0 : index
    %c0_10 = arith.constant 0 : index
    %15 = vector.load %arg5[%c0_9, %c0_10] : memref<1x256xf32, #tpu.memory_space<vmem>>, vector<1x256xf32>
    %16 = vector.broadcast %15 : vector<1x256xf32> to vector<8x256xf32>
    %17 = arith.subf %14, %16 : vector<8x256xf32>
    %c0_11 = arith.constant 0 : index
    %c0_12 = arith.constant 0 : index
    %18 = vector.load %arg7[%c0_11, %c0_12] : memref<8x256xf32, #tpu.memory_space<vmem>>, vector<8x256xf32>
    tpu.vector_store %arg7[%c0_11, %c0_12], %17 {strides = array<i32>} : memref<8x256xf32, #tpu.memory_space<vmem>>, vector<8x256xf32>,
    return
  }
  func.func @transform_0(%arg0: i32) -> (i32, i32) {
    %c0_i32 = arith.constant 0 : i32
    %c0_i32_0 = arith.constant 0 : i32
    return %arg0, %c0_i32 : i32, i32
  }
  func.func @transform_1(%arg0: i32) -> (i32, i32) {
    %c0_i32 = arith.constant 0 : i32
    %c0_i32_0 = arith.constant 0 : i32
    %c0_i32_1 = arith.constant 0 : i32
    return %c0_i32, %c0_i32_0 : i32, i32
  }
  func.func @transform_2(%arg0: i32) -> (i32, i32) {
    %c0_i32 = arith.constant 0 : i32
    %c0_i32_0 = arith.constant 0 : i32
    %c0_i32_1 = arith.constant 0 : i32
    return %c0_i32, %c0_i32_0 : i32, i32
  }
  func.func @transform_3(%arg0: i32) -> (i32, i32) {
    %c0_i32 = arith.constant 0 : i32
    %c0_i32_0 = arith.constant 0 : i32
    %c0_i32_1 = arith.constant 0 : i32
    return %c0_i32, %c0_i32_0 : i32, i32
  }
  func.func @transform_4(%arg0: i32) -> (i32, i32) {
    %c0_i32 = arith.constant 0 : i32
    %c0_i32_0 = arith.constant 0 : i32
    %c0_i32_1 = arith.constant 0 : i32
    return %c0_i32, %c0_i32_0 : i32, i32
  }
  func.func @transform_5(%arg0: i32) -> (i32, i32) {
    %c0_i32 = arith.constant 0 : i32
    %c0_i32_0 = arith.constant 0 : i32
    return %arg0, %c0_i32 : i32, i32
  }
  func.func @transform_6(%arg0: i32) -> (i32, i32) {
    %c0_i32 = arith.constant 0 : i32
    %c0_i32_0 = arith.constant 0 : i32
    return %arg0, %c0_i32 : i32, i32
  }
}

</mosaic_0001>

<bundles_post_ra>
// kernel: tpu_custom_call.1
= control target key start
LH: loop header
LB: loop body
LE: loop exit
PB: predicated region body
PF: predicated region fallthrough
CT: control target
= control target key end

     0   :  { %12 = vsyncpa [#allocation3], 0  ;;  %s331_s0 = inlined_call_operand.hbm [shape: f32[8,16], index: 0, kind: input, shape index: {}]   ;;  %s332_s1 = inlined_call_operand.vmem [shape: f32[1,16], index: 1, kind: input, shape index: {}]   ;;  %s333_s2 = inlined_call_operand.vmem [shape: f32[1,16], index: 2, kind: input, shape index: {}]   ;;  %s334_s3 = inlined_call_operand.vmem [shape: f32[1,256], index: 3, kind: input, shape index: {}]   ;;  %s335_s4 = inlined_call_operand.vmem [shape: f32[1,256], index: 4, kind: input, shape index: {}]   ;;  %s336_s5 = inlined_call_operand.hbm [shape: f32[8,16], index: 5, kind: output, shape index: {0}]   ;;  %s337_s6 = inlined_call_operand.hbm [shape: f32[8,256], index: 6, kind: output, shape index: {1}]  }
   0x1   :  { %13 = vsyncpa [#allocation4], 0 }
   0x2   :  { %14 = vsyncpa [#allocation7], 0  ;;  %s236_s21 = smov [#allocation2]   ;;  %s164_s25 = scalar_lea.hbm %s331_s0, 128 }
   0x3   :  { %s21_s22 = sshll.u32 %s236_s21, 4  ;;  %p165_p0 = scmp.ne.s32.totalorder %s331_s0, %s164_s25  ;;  %s22_s22 = int_to_ptr.vmem [resolvable:$true] %s21_s22 }
   0x4   :  { %p168_p1 = scmp.lt.u32.totalorder %s164_s25, %s331_s0 }
   0x6   :  { %p170_p2 = pnand %p168_p1, %p165_p0 }
   0x8   :  { %173 = shalt.err (!%p170_p2)
}
   0x9   :  { %s174_s30 = scalar_lea.vmem %s22_s22, 128  ;;  %p179_p4 = scmp.lt.s32.totalorder %s22_s22, %s22_s22 }
   0xa   :  { %p175_p3 = scmp.ne.s32.totalorder %s22_s22, %s174_s30  ;;  %p180_p5 = scmp.lt.s32.totalorder %s174_s30, %s174_s30 }
   0xc   :  { %p181_p6 = por %p180_p5, %p179_p4 }
   0xe   :  { %p182_p7 = pnand %p181_p6, %p175_p3 }
  0x10   :  { %185 = shalt.err (!%p182_p7)
}
  0x11   :  { %24 = dma.hbm_to_vmem [thread:$0]  %s331_s0, 128, %s22_s22, [#allocation3]  }
  0x12   :  { %230 = dma.done.wait [#allocation3], 128  }
  0x13   :  { %231 = vsyncadd [#allocation3], 4294967168  ;;  %v36_v0 = vld [vmem:[#allocation2] sm:$0xff]  ;;  %s237_s13 = smov 16   ;;  %s238_s14 = smov 48   ;;  %vm56_vm0 = vcmask 130048  }
  0x14   :  { %v37_v1 = vmul.f32 %v36_v0, %v36_v0  ;;  %v152_v2 = vld [vmem:[%s333_s2] ss:$0 sm:$0xff]  ;;  %s239_s0 = smov [#allocation5]   ;;  %s240_s16 = smov 32  }
  0x15   :  { %v153_v3 = vld [vmem:[%s332_s1] ss:$0 sm:$0xff]  ;;  %s129_s15 = sshll.u32 %s239_s0, 4  ;;  %s241_s17 = smov 64   ;;  %s130_s15 = int_to_ptr.vmem [resolvable:$true] %s129_s15 }
  0x16   :  { %59 = vrot.lane.b32.xlu0 %v37_v1, %s237_s13  ;;  %65 = vrot.lane.b32.xlu1 %v37_v1, %s238_s14  ;;  %v39_v4 = vmul.f32 %v37_v1, %v36_v0  ;;  %v54_v5 = vmul.f32 %v153_v3, %v36_v0  ;;  %s186_s2 = scalar_lea.vmem %s130_s15, 128  ;;  %p191_p9 = scmp.lt.s32.totalorder %s130_s15, %s130_s15 }
  0x17   :  { %p187_p8 = scmp.ne.s32.totalorder %s130_s15, %s186_s2  ;;  %p192_p10 = scmp.lt.s32.totalorder %s186_s2, %s186_s2 }
  0x18   :  { %v46_v6 = vmul.f32 %v152_v2, %v39_v4 }
  0x19   :  { %p193_p11 = por %p192_p10, %p191_p9 }
  0x1a   :  { %62 = vrot.lane.b32.xlu0 %v37_v1, %s240_s16  ;;  %68 = vrot.lane.b32.xlu1 %v37_v1, %s241_s17  ;;  %v55_v7 = vsub.f32 %v46_v6, %v54_v5 }
  0x1b   :  { %p194_p12 = pnand %p193_p11, %p187_p8 }
  0x1c   :  { %57 = vst.msk [vmem:[#allocation5] sm:$0xff] %vm56_vm0, %v55_v7 }
  0x1d   :  { %197 = shalt.err (!%p194_p12)
}
  0x1e   :  { %s198_s19 = scalar_lea.hbm %s336_s5, 128 }
  0x1f   :  { %p199_p13 = scmp.ne.s32.totalorder %s336_s5, %s198_s19  ;;  %p202_p0 = scmp.lt.u32.totalorder %s198_s19, %s336_s5 }
  0x21   :  { %p204_p1 = pnand %p202_p0, %p199_p13 }
  0x23   :  { %207 = shalt.err (!%p204_p1)
}
  0x24   :  { %132 = dma.vmem_to_hbm [thread:$0]  %s130_s15, 128, %s336_s5, [#allocation4]   ;;  %v95_v8 = vlaneseq  ;;  %vm81_vm1 = vcmask 261120   ;;  %vm83_vm2 = vcmask 392192   ;;  %vm85_vm3 = vcmask 523264  }
  0x25   :  { %s242_s26 = smov 80   ;;  %s243_s27 = smov 96   ;;  %vm87_vm4 = vcmask 654336   ;;  %v93_v20 = vld [vmem:[%s334_s3] sm:$0x3]  ;;  %vm89_vm5 = vcmask 785408  }
  0x26   :  { %71 = vrot.lane.b32.xlu0 %v37_v1, %s242_s26  ;;  %74 = vrot.lane.b32.xlu1 %v37_v1, %s243_s27  ;;  %s244_s28 = smov 112   ;;  %v96_v11 = vshrl.u32 %v95_v8, 7  ;;  %v107_v24 = vld [vmem:[%s335_s4] sm:$0x3]  ;;  %vm91_vm6 = vcmask 916480   ;;  %s245_s8 = smov [#allocation6]  }
  0x27   :  { %s139_s9 = sshll.u32 %s245_s8, 4  ;;  %s140_s9 = int_to_ptr.vmem [resolvable:$true] %s139_s9 }
  0x28   :  { %v97_v17 = vsub.s32 0, %v96_v11  ;;  %v101_v18 = vsub.s32 1, %v96_v11  ;;  %s208_s3 = scalar_lea.vmem %s140_s9, 256  ;;  %p213_p3 = scmp.lt.s32.totalorder %s140_s9, %s140_s9 }
  0x29   :  { %p209_p2 = scmp.ne.s32.totalorder %s140_s9, %s208_s3  ;;  %p214_p4 = scmp.lt.s32.totalorder %s208_s3, %s208_s3 }
  0x2a   :  { %77 = vrot.lane.b32.xlu0 %v37_v1, %s244_s28  ;;  %v98_v25 = vrot.slane %v93_v20, %v97_v17  ;;  %v102_v26 = vrot.slane %v93_v20, %v101_v18  ;;  %v112_v28 = vrot.slane %v107_v24, %v97_v17  ;;  %v116_v29 = vrot.slane %v107_v24, %v101_v18 }
  0x2b   :  { %p215_p5 = por %p214_p4, %p213_p3 }
  0x2d   :  { %p216_p6 = pnand %p215_p5, %p209_p2 }
  0x88   :  { %v60_v9 = vpop.permute.xlu0 %59  ;;  %v66_v10 = vpop.permute.xlu1 %65 }
  0x89   :  { %v80_v12 = vsel %vm56_vm0, %v37_v1, %v60_v9 }
  0x8c   :  { %v63_v13 = vpop.permute.xlu0 %62  ;;  %v69_v14 = vpop.permute.xlu1 %68 }
  0x8d   :  { %v82_v15 = vsel %vm81_vm1, %v80_v12, %v63_v13 }
  0x8e   :  { %v84_v16 = vsel %vm83_vm2, %v82_v15, %v66_v10 }
  0x8f   :  { %v86_v19 = vsel %vm85_vm3, %v84_v16, %v69_v14 }
  0x98   :  { %v72_v21 = vpop.permute.xlu0 %71  ;;  %v75_v23 = vpop.permute.xlu1 %74 }
  0x99   :  { %v88_v22 = vsel %vm87_vm4, %v86_v19, %v72_v21 }
  0x9a   :  { %v90_v27 = vsel %vm89_vm5, %v88_v22, %v75_v23 }
  0x9c   :  { %v78_v30 = vpop.permute.xlu0 %77 }
  0x9d   :  { %v92_v31 = vsel %vm91_vm6, %v90_v27, %v78_v30 }
  0x9e   :  { %v105_v32 = vmul.f32 %v98_v25, %v92_v31  ;;  %v106_v33 = vmul.f32 %v102_v26, %v92_v31 }
  0xa0   :  { %v119_v34 = vsub.f32 %v105_v32, %v112_v28  ;;  %v120_v35 = vsub.f32 %v106_v33, %v116_v29 }
  0xa2   :  { %121 = vst [vmem:[#allocation6] sm:$0xff] %v119_v34  ;;  %122 = vst [vmem:[#allocation6 + $0x8] sm:$0xff] %v120_v35 }
  0xa3   :  { %219 = shalt.err (!%p216_p6)
}
  0xa4   :  { %s220_s11 = scalar_lea.hbm %s337_s6, 256 }
  0xa5   :  { %p221_p7 = scmp.ne.s32.totalorder %s337_s6, %s220_s11  ;;  %p224_p8 = scmp.lt.u32.totalorder %s220_s11, %s337_s6 }
  0xa7   :  { %p226_p9 = pnand %p224_p8, %p221_p7 }
  0xa9   :  { %229 = shalt.err (!%p226_p9)
}
  0xaa   :  { %142 = dma.vmem_to_hbm [thread:$0]  %s140_s9, 256, %s337_s6, [#allocation7]  }
  0xab   :  { %232 = dma.done.wait [#allocation4], 128  }
  0xac   :  { %233 = vsyncadd [#allocation4], 4294967168 }
  0xad   :  { %234 = dma.done.wait [#allocation7], 256  }
  0xae   :  { %235 = vsyncadd [#allocation7], 4294967040 }
  0xaf   :  { %149 = vsyncpa [#allocation3], 1 }
  0xb0   :  { %150 = vsyncpa [#allocation4], 1 }
  0xb1   :  { %151 = vsyncpa [#allocation7], 1 }

</bundles_post_ra>
